<compile_context>
chip_gen: v7x
topology: tpu7x:2x2x1
jax: 0.10.0
libtpu: 0.0.40
codegen_flags: <defaults>
</compile_context>

<pallas_src>
from functools import partial

import jax
import jax.numpy as jnp
from jax.experimental import pallas as pl
from jax.experimental.pallas import tpu as pltpu

BN_EPS = 1e-5
_HI = jax.lax.Precision.HIGHEST


# ------------------------------ fused Pallas kernel ------------------------------

def _make_fused_kernel(hidden_dims):
    """Fused MLP kernel.

    hidden_dims = (d1, d2, ..., dH): widths of every hidden layer (bottom +
    tower hidden).  Operand order after the two activation refs:
      w1_cat (FE, d1) bf16, w1_dense (Nnum+1, d1) f32,
      w_2 (d1, d2) bf16, ..., w_H (d_{H-1}, dH) bf16,
      pack (1, d1+...+dH + dH + 1) f32  = [b1 | b2 | ... | bH | w_out | b_out],
      out_ref (tb, 1) f32
    """
    n_rest = len(hidden_dims) - 1

    def kernel(cat_ref, dense_ref, *refs):
        w1c = refs[0]
        w1d = refs[1]
        rest_ws = refs[2:2 + n_rest]
        pack_ref = refs[2 + n_rest]
        o_ref = refs[3 + n_rest]

        off = 0
        d1 = hidden_dims[0]
        b1 = pack_ref[:, off:off + d1]            # (1, d1) f32
        off += d1

        # First hidden layer with the numerical/action linears and the concat
        # folded in (exact by linearity).  MXU in bf16, f32 accumulation.
        x = (
            jnp.dot(cat_ref[...], w1c[...], preferred_element_type=jnp.float32)
            + jnp.dot(dense_ref[...], w1d[...], preferred_element_type=jnp.float32)
            + b1
        )
        x = jnp.maximum(x, 0.0)

        for l in range(n_rest):
            d = hidden_dims[l + 1]
            b = pack_ref[:, off:off + d]
            off += d
            x = jnp.dot(x.astype(jnp.bfloat16), rest_ws[l][...],
                        preferred_element_type=jnp.float32) + b
            x = jnp.maximum(x, 0.0)

        dH = hidden_dims[-1]
        w_out = pack_ref[:, off:off + dH]         # (1, dH)
        off += dH
        b_out = pack_ref[:, off:off + 1]          # (1, 1)

        # Final Linear(d_H, 1) as a lane reduction (no N=1 MXU matmul).
        o_ref[...] = jnp.sum(x * w_out, axis=-1, keepdims=True) + b_out

    return kernel


# ------------------------------ tiling helpers ------------------------------

def _round_up(x, m):
    return ((x + m - 1) // m) * m


def _batch_tiling(batch, batch_tile):
    """Pick (tile_rows, padded_batch).  tile_rows is a multiple of 8; for
    128 < B <= batch_tile the batch is split into >=2 tiles so the 'parallel'
    grid axis can occupy both TensorCores on v7x megacore."""
    batch_tile = max(8, _round_up(int(batch_tile), 8))
    if batch > batch_tile:
        tb = batch_tile
    elif batch > 128:
        tb = min(batch_tile, _round_up(-(-batch // 2), 8))
    else:
        tb = _round_up(batch, 8)
    b_pad = _round_up(batch, tb)
    return tb, b_pad


# ------------------------------ fused forward ------------------------------

@partial(jax.jit, static_argnames=("hidden_dims", "batch_tile"))
def _critic_forward_impl(embedding, offsets, fused_weights, categorical_x,
                         numerical_x, action, *, hidden_dims, batch_tile):
    B = categorical_x.shape[0]
    tb, b_pad = _batch_tiling(B, batch_tile)

    # Pad BEFORE the gather: pads only the small int32/dense inputs instead of
    # the big gathered (B, F*E) activation.  Index 0 is always a valid row.
    if b_pad != B:
        pad = ((0, b_pad - B), (0, 0))
        categorical_x = jnp.pad(categorical_x, pad)
        numerical_x = jnp.pad(numerical_x, pad)
        action = jnp.pad(action, pad)

    # Embedding lookup (bf16 table -> bf16 rows) + flatten, kept as plain-JAX
    # glue inside the same jit.
    # TODO(synk): fuse the gather into the kernel (scalar-prefetched indices +
    # VMEM-resident table) once in-kernel axis-0 gathers lower reliably for
    # arbitrary vocab sizes; for tiny rows (E*2B << 512B) manual DMA gather is
    # a net loss, so the XLA gather stays for now.
    idx = categorical_x + offsets[None, :]
    cat_flat = jnp.take(embedding, idx, axis=0).reshape(b_pad, -1)     # bf16
    dense = jnp.concatenate(
        [numerical_x.astype(jnp.float32), action.astype(jnp.float32)], axis=1)

    fe = cat_flat.shape[1]
    nd = dense.shape[1]

    act_specs = [
        pl.BlockSpec((tb, fe), lambda i: (i, 0)),
        pl.BlockSpec((tb, nd), lambda i: (i, 0)),
    ]
    # Weights/biases: whole-array blocks with a constant index_map -> DMA'd to
    # VMEM once and resident across all grid steps.
    w_specs = [pl.BlockSpec(w.shape, lambda i: (0, 0)) for w in fused_weights]

    out = pl.pallas_call(
        _make_fused_kernel(hidden_dims),
        grid=(b_pad // tb,),
        in_specs=act_specs + w_specs,
        out_specs=pl.BlockSpec((tb, 1), lambda i: (i, 0)),
        out_shape=jax.ShapeDtypeStruct((b_pad, 1), jnp.float32),
        compiler_params=pltpu.CompilerParams(
            dimension_semantics=("parallel",),         # megacore batch sharding
            vmem_limit_bytes=48 * 1024 * 1024,         # above v5e/v6e/v7x scoped defaults
        ),
    )(cat_flat, dense, *fused_weights)
    return out[:B, 0]                                  # squeeze(1) -> (B,)


def critic_forward(params, categorical_x, numerical_x, action, *, batch_tile=512):
    return _critic_forward_impl(
        params["embedding"], params["offsets"], tuple(params["fused_weights"]),
        categorical_x, numerical_x, action,
        hidden_dims=tuple(params["hidden_dims"]), batch_tile=int(batch_tile))


# ------------------------------ Parameter init / folding ------------------------------

def _linear_init(key, fan_in, fan_out):
    # PyTorch nn.Linear default: U(-1/sqrt(fan_in), 1/sqrt(fan_in))
    kw, kb = jax.random.split(key)
    bound = 1.0 / jnp.sqrt(jnp.float32(fan_in))
    w = jax.random.uniform(kw, (fan_in, fan_out), jnp.float32, -bound, bound)
    b = jax.random.uniform(kb, (1, fan_out), jnp.float32, -bound, bound)
    return w, b


def _bn_init(dim):
    # PyTorch BatchNorm1d fresh init (eval mode uses running stats).
    return (
        jnp.ones((1, dim), jnp.float32),   # gamma
        jnp.zeros((1, dim), jnp.float32),  # beta
        jnp.zeros((1, dim), jnp.float32),  # running_mean
        jnp.ones((1, dim), jnp.float32),   # running_var
    )


def _fold_params(params, num_fields, embed_dim):
    """Fold eval-mode BN into the linears, fold the numerical/action linears and
    the concat into layer 1, pack all biases + the output row into one array.
    All folding math in f32; one cast to bf16 at the very end."""

    def bn_fold(w, b, gamma, beta, mu, var):
        scale = gamma * jax.lax.rsqrt(var + BN_EPS)
        return w * scale, (b - mu) * scale + beta

    hidden = list(params["bottom"]) + list(params["tower_hidden"])
    assert len(hidden) >= 1, "Critic needs at least one bottom/tower hidden layer"

    fe = num_fields * embed_dim
    e = embed_dim

    w1, b1 = bn_fold(*hidden[0])                    # (FE + 2E, d1), (1, d1)
    w1_cat = w1[:fe]                                # (FE, d1)
    w1_num_part = w1[fe:fe + e]                     # (E, d1)
    w1_act_part = w1[fe + e:fe + 2 * e]             # (E, d1)
    w1_num = jnp.dot(params["num_w"], w1_num_part, precision=_HI)   # (Nnum, d1)
    w1_act = jnp.dot(params["act_w"], w1_act_part, precision=_HI)   # (1, d1)
    w1_dense = jnp.concatenate([w1_num, w1_act], axis=0)            # (Nnum+1, d1)
    b1_eff = (b1
              + jnp.dot(params["num_b"], w1_num_part, precision=_HI)
              + jnp.dot(params["act_b"], w1_act_part, precision=_HI))

    hidden_dims = [int(w1.shape[1])]
    rest_ws, rest_bs = [], []
    for layer in hidden[1:]:
        w, b = bn_fold(*layer)
        rest_ws.append(w.astype(jnp.bfloat16))
        rest_bs.append(b)
        hidden_dims.append(int(w.shape[1]))

    w_out_row = params["tower_out_w"].T             # (1, dH)
    b_out = params["tower_out_b"]                   # (1, 1)
    pack = jnp.concatenate([b1_eff] + rest_bs + [w_out_row, b_out],
                           axis=1).astype(jnp.float32)

    fused = [w1_cat.astype(jnp.bfloat16),
             w1_dense.astype(jnp.float32),
             *rest_ws,
             pack]
    return fused, tuple(hidden_dims)


def init_critic_params(key, field_dims, numerical_num, embed_dim,
                       bottom_mlp_dims, tower_mlp_dims):
    keys = jax.random.split(key, 8)
    total_vocab = int(sum(field_dims))
    # xavier_uniform for the embedding table (as in EmbeddingLayer.__init__);
    # stored bf16 (halves gather + cat_flat HBM traffic).
    limit = jnp.sqrt(6.0 / jnp.float32(total_vocab + embed_dim))
    embedding = jax.random.uniform(
        keys[0], (total_vocab, embed_dim), jnp.float32, -limit, limit)
    offsets = jnp.array(
        [0] + list(jnp.cumsum(jnp.array(field_dims))[:-1]), dtype=jnp.int32)

    num_w, num_b = _linear_init(keys[1], numerical_num, embed_dim)
    act_w, act_b = _linear_init(keys[2], 1, embed_dim)

    embed_output_dim = (len(field_dims) + 2) * embed_dim

    bottom = []
    in_dim = embed_output_dim
    bkeys = jax.random.split(keys[3], len(bottom_mlp_dims))
    for k, d in zip(bkeys, bottom_mlp_dims):
        w, b = _linear_init(k, in_dim, d)
        bottom.append((w, b) + _bn_init(d))
        in_dim = d

    tower_hidden = []
    tkeys = jax.random.split(keys[4], len(tower_mlp_dims))
    for k, d in zip(tkeys, tower_mlp_dims):
        w, b = _linear_init(k, in_dim, d)
        tower_hidden.append((w, b) + _bn_init(d))
        in_dim = d
    tower_out_w, tower_out_b = _linear_init(keys[5], in_dim, 1)

    params = {
        "embedding": embedding.astype(jnp.bfloat16),
        "offsets": offsets,
        "num_w": num_w, "num_b": num_b,
        "act_w": act_w, "act_b": act_b,
        "bottom": bottom,
        "tower_hidden": tower_hidden,
        "tower_out_w": tower_out_w, "tower_out_b": tower_out_b,
    }
    fused_weights, hidden_dims = _fold_params(params, len(field_dims), embed_dim)
    params["fused_weights"] = fused_weights
    params["hidden_dims"] = hidden_dims
    return params


# ------------------------------ Plain-JAX reference ------------------------------

def critic_forward_reference(params, categorical_x, numerical_x, action):
    """Unfused/unfolded f32 reference of the original PyTorch forward."""
    b = categorical_x.shape[0]
    idx = categorical_x + params["offsets"][None, :]
    emb = jnp.take(params["embedding"].astype(jnp.float32), idx, axis=0)  # (B,F,E)
    num_emb = jnp.dot(numerical_x, params["num_w"], precision=_HI) + params["num_b"]
    act_emb = jnp.dot(action, params["act_w"], precision=_HI) + params["act_b"]
    x = jnp.concatenate([emb, num_emb[:, None, :], act_emb[:, None, :]], axis=1)
    x = x.reshape(b, -1)
    for (w, bb, g, be, mu, var) in list(params["bottom"]) + list(params["tower_hidden"]):
        y = jnp.dot(x, w, precision=_HI) + bb
        y = (y - mu) * (g * jax.lax.rsqrt(var + BN_EPS)) + be
        x = jnp.maximum(y, 0.0)
    out = jnp.dot(x, params["tower_out_w"], precision=_HI) + params["tower_out_b"]
    return out[:, 0]


# ------------------------------ Demo / smoke test ------------------------------

def _make_inputs(key, batch, field_dims, numerical_num):
    kc, kn, ka = jax.random.split(key, 3)
    cat_keys = jax.random.split(kc, len(field_dims))
    categorical_x = jnp.stack(
        [jax.random.randint(ck, (batch,), 0, d, dtype=jnp.int32)
         for ck, d in zip(cat_keys, field_dims)], axis=1)             # (B, F)
    numerical_x = jax.random.normal(kn, (batch, numerical_num), jnp.float32)
    action = jax.random.uniform(ka, (batch, 1), jnp.float32)
    return categorical_x, numerical_x, action


if __name__ == "__main__":
    categorical_field_dims = (10, 12, 8)
    numerical_num = 5
    embed_dim = 16
    bottom_mlp_dims = (64, 32)
    tower_mlp_dims = (32, 16)
    # dropout = 0.2  # identity at inference

    key = jax.random.PRNGKey(0)
    k_in, k_param, k_in2, k_in3 = jax.random.split(key, 4)

    params = init_critic_params(
        k_param, categorical_field_dims, numerical_num, embed_dim,
        bottom_mlp_dims, tower_mlp_dims)

    RTOL = ATOL = 2e-2   # bf16 weights/activations vs f32 HIGHEST reference

    # 1) Tiny batch -> single grid step (tb padded to 8).
    batch = 4
    cat_x, num_x, act = _make_inputs(k_in, batch, categorical_field_dims, numerical_num)
    out = jax.block_until_ready(critic_forward(params, cat_x, num_x, act))
    ref = jax.block_until_ready(critic_forward_reference(params, cat_x, num_x, act))
    assert out.shape == (batch,), out.shape
    assert bool(jnp.all(jnp.isfinite(out)))
    assert bool(jnp.allclose(out, ref, rtol=RTOL, atol=ATOL)), (out, ref)

    # 2) B=200 > 128 -> split into 2 grid steps (v7x megacore path) + padding
    #    before the gather (200 -> 208 rows).
    batch2 = 200
    cat2, num2, act2 = _make_inputs(k_in2, batch2, categorical_field_dims, numerical_num)
    out2 = jax.block_until_ready(critic_forward(params, cat2, num2, act2))
    ref2 = jax.block_until_ready(critic_forward_reference(params, cat2, num2, act2))
    assert out2.shape == (batch2,), out2.shape
    assert bool(jnp.all(jnp.isfinite(out2)))
    assert bool(jnp.allclose(out2, ref2, rtol=RTOL, atol=ATOL))

    # 3) Same batch with a small explicit tile -> 4 grid steps (pipelining path).
    out3 = jax.block_until_ready(
        critic_forward(params, cat2, num2, act2, batch_tile=64))
    assert out3.shape == (batch2,)
    assert bool(jnp.allclose(out3, ref2, rtol=RTOL, atol=ATOL))

    print("KERNEL_OK")
</pallas_src>

<mosaic_0001>
module attributes {stable_mosaic.version = 11 : i64} {
  func.func @kernel(%arg0: i32, %arg1: memref<8x48xbf16, #tpu.memory_space<vmem>>, %arg2: memref<8x6xf32, #tpu.memory_space<vmem>>, %arg3: memref<48x64xbf16, #tpu.memory_space<vmem>>, %arg4: memref<6x64xf32, #tpu.memory_space<vmem>>, %arg5: memref<64x32xbf16, #tpu.memory_space<vmem>>, %arg6: memref<32x32xbf16, #tpu.memory_space<vmem>>, %arg7: memref<32x16xbf16, #tpu.memory_space<vmem>>, %arg8: memref<1x161xf32, #tpu.memory_space<vmem>>, %arg9: memref<8x1xf32, #tpu.memory_space<vmem>>) attributes {dimension_semantics = [#tpu.dimension_semantics<parallel>], iteration_bounds = array<i64: 1>, scalar_prefetch = 0 : i64, scratch_operands = 0 : i64, tpu.core_type = #tpu.core_type<tc>, window_params = [{transform_indices = @transform_0, window_bounds = array<i64: 8, 48>}, {transform_indices = @transform_1, window_bounds = array<i64: 8, 6>}, {pipeline_mode = #tpu.pipeline_mode<synchronous>, transform_indices = @transform_2, window_bounds = array<i64: 48, 64>}, {pipeline_mode = #tpu.pipeline_mode<synchronous>, transform_indices = @transform_3, window_bounds = array<i64: 6, 64>}, {pipeline_mode = #tpu.pipeline_mode<synchronous>, transform_indices = @transform_4, window_bounds = array<i64: 64, 32>}, {pipeline_mode = #tpu.pipeline_mode<synchronous>, transform_indices = @transform_5, window_bounds = array<i64: 32, 32>}, {pipeline_mode = #tpu.pipeline_mode<synchronous>, transform_indices = @transform_6, window_bounds = array<i64: 32, 16>}, {pipeline_mode = #tpu.pipeline_mode<synchronous>, transform_indices = @transform_7, window_bounds = array<i64: 1, 161>}, {transform_indices = @transform_8, window_bounds = array<i64: 8, 1>}]} {
    %c0 = arith.constant 0 : index
    %c0_0 = arith.constant 0 : index
    %0 = vector.load %arg8[%c0, %c0_0] : memref<1x161xf32, #tpu.memory_space<vmem>>, vector<1x64xf32>
    %c0_1 = arith.constant 0 : index
    %c0_2 = arith.constant 0 : index
    %1 = vector.load %arg1[%c0_1, %c0_2] : memref<8x48xbf16, #tpu.memory_space<vmem>>, vector<8x48xbf16>
    %c0_3 = arith.constant 0 : index
    %c0_4 = arith.constant 0 : index
    %2 = vector.load %arg3[%c0_3, %c0_4] : memref<48x64xbf16, #tpu.memory_space<vmem>>, vector<48x64xbf16>
    %cst = arith.constant dense<0.000000e+00> : vector<8x64xf32>
    %3 = tpu.matmul %1, %2, %cst {dimension_numbers = #tpu.dot_dimension_numbers<[1], [0], [0], [1], [0, 0, 1, 1], [], []>} : vector<8x48xbf16>, vector<48x64xbf16>, vector<8x64xf32> -> vector<8x64xf32>
    %c0_5 = arith.constant 0 : index
    %c0_6 = arith.constant 0 : index
    %4 = vector.load %arg2[%c0_5, %c0_6] : memref<8x6xf32, #tpu.memory_space<vmem>>, vector<8x6xf32>
    %c0_7 = arith.constant 0 : index
    %c0_8 = arith.constant 0 : index
    %5 = vector.load %arg4[%c0_7, %c0_8] : memref<6x64xf32, #tpu.memory_space<vmem>>, vector<6x64xf32>
    %cst_9 = arith.constant dense<0.000000e+00> : vector<8x64xf32>
    %6 = tpu.matmul %4, %5, %cst_9 {dimension_numbers = #tpu.dot_dimension_numbers<[1], [0], [0], [1], [0, 0, 1, 1], [], []>} : vector<8x6xf32>, vector<6x64xf32>, vector<8x64xf32> -> vector<8x64xf32>
    %7 = arith.addf %3, %6 : vector<8x64xf32>
    %8 = vector.broadcast %0 : vector<1x64xf32> to vector<8x64xf32>
    %9 = arith.addf %7, %8 : vector<8x64xf32>
    %cst_10 = arith.constant 0.000000e+00 : f32
    %10 = vector.broadcast %cst_10 : f32 to vector<8x64xf32>
    %11 = arith.maximumf %9, %10 : vector<8x64xf32>
    %c0_11 = arith.constant 0 : index
    %c64 = arith.constant 64 : index
    %12 = vector.load %arg8[%c0_11, %c64] : memref<1x161xf32, #tpu.memory_space<vmem>>, vector<1x32xf32>
    %13 = arith.truncf %11 : vector<8x64xf32> to vector<8x64xbf16>
    %c0_12 = arith.constant 0 : index
    %c0_13 = arith.constant 0 : index
    %14 = vector.load %arg5[%c0_12, %c0_13] : memref<64x32xbf16, #tpu.memory_space<vmem>>, vector<64x32xbf16>
    %cst_14 = arith.constant dense<0.000000e+00> : vector<8x32xf32>
    %15 = tpu.matmul %13, %14, %cst_14 {dimension_numbers = #tpu.dot_dimension_numbers<[1], [0], [0], [1], [0, 0, 1, 1], [], []>} : vector<8x64xbf16>, vector<64x32xbf16>, vector<8x32xf32> -> vector<8x32xf32>
    %16 = vector.broadcast %12 : vector<1x32xf32> to vector<8x32xf32>
    %17 = arith.addf %15, %16 : vector<8x32xf32>
    %cst_15 = arith.constant 0.000000e+00 : f32
    %18 = vector.broadcast %cst_15 : f32 to vector<8x32xf32>
    %19 = arith.maximumf %17, %18 : vector<8x32xf32>
    %c0_16 = arith.constant 0 : index
    %c96 = arith.constant 96 : index
    %20 = vector.load %arg8[%c0_16, %c96] : memref<1x161xf32, #tpu.memory_space<vmem>>, vector<1x32xf32>
    %21 = arith.truncf %19 : vector<8x32xf32> to vector<8x32xbf16>
    %c0_17 = arith.constant 0 : index
    %c0_18 = arith.constant 0 : index
    %22 = vector.load %arg6[%c0_17, %c0_18] : memref<32x32xbf16, #tpu.memory_space<vmem>>, vector<32x32xbf16>
    %cst_19 = arith.constant dense<0.000000e+00> : vector<8x32xf32>
    %23 = tpu.matmul %21, %22, %cst_19 {dimension_numbers = #tpu.dot_dimension_numbers<[1], [0], [0], [1], [0, 0, 1, 1], [], []>} : vector<8x32xbf16>, vector<32x32xbf16>, vector<8x32xf32> -> vector<8x32xf32>
    %24 = vector.broadcast %20 : vector<1x32xf32> to vector<8x32xf32>
    %25 = arith.addf %23, %24 : vector<8x32xf32>
    %cst_20 = arith.constant 0.000000e+00 : f32
    %26 = vector.broadcast %cst_20 : f32 to vector<8x32xf32>
    %27 = arith.maximumf %25, %26 : vector<8x32xf32>
    %c0_21 = arith.constant 0 : index
    %c128 = arith.constant 128 : index
    %28 = vector.load %arg8[%c0_21, %c128] : memref<1x161xf32, #tpu.memory_space<vmem>>, vector<1x16xf32>
    %29 = arith.truncf %27 : vector<8x32xf32> to vector<8x32xbf16>
    %c0_22 = arith.constant 0 : index
    %c0_23 = arith.constant 0 : index
    %30 = vector.load %arg7[%c0_22, %c0_23] : memref<32x16xbf16, #tpu.memory_space<vmem>>, vector<32x16xbf16>
    %cst_24 = arith.constant dense<0.000000e+00> : vector<8x16xf32>
    %31 = tpu.matmul %29, %30, %cst_24 {dimension_numbers = #tpu.dot_dimension_numbers<[1], [0], [0], [1], [0, 0, 1, 1], [], []>} : vector<8x32xbf16>, vector<32x16xbf16>, vector<8x16xf32> -> vector<8x16xf32>
    %32 = vector.broadcast %28 : vector<1x16xf32> to vector<8x16xf32>
    %33 = arith.addf %31, %32 : vector<8x16xf32>
    %cst_25 = arith.constant 0.000000e+00 : f32
    %34 = vector.broadcast %cst_25 : f32 to vector<8x16xf32>
    %35 = arith.maximumf %33, %34 : vector<8x16xf32>
    %c0_26 = arith.constant 0 : index
    %c144 = arith.constant 144 : index
    %36 = vector.load %arg8[%c0_26, %c144] : memref<1x161xf32, #tpu.memory_space<vmem>>, vector<1x16xf32>
    %c0_27 = arith.constant 0 : index
    %c160 = arith.constant 160 : index
    %37 = vector.load %arg8[%c0_27, %c160] : memref<1x161xf32, #tpu.memory_space<vmem>>, vector<1x1xf32>
    %38 = vector.broadcast %36 : vector<1x16xf32> to vector<8x16xf32>
    %39 = arith.mulf %35, %38 : vector<8x16xf32>
    %cst_28 = arith.constant dense<0.000000e+00> : vector<8xf32>
    %40 = vector.multi_reduction <add>, %39, %cst_28 [1] : vector<8x16xf32> to vector<8xf32>
    %41 = vector.shape_cast %40 : vector<8xf32> to vector<8x1xf32>
    %42 = vector.broadcast %37 : vector<1x1xf32> to vector<8x1xf32>
    %43 = arith.addf %41, %42 : vector<8x1xf32>
    %c0_29 = arith.constant 0 : index
    %c0_30 = arith.constant 0 : index
    %44 = vector.load %arg9[%c0_29, %c0_30] : memref<8x1xf32, #tpu.memory_space<vmem>>, vector<8x1xf32>
    tpu.vector_store %arg9[%c0_29, %c0_30], %43 {strides = array<i32>} : memref<8x1xf32, #tpu.memory_space<vmem>>, vector<8x1xf32>,
    return
  }
  func.func @transform_0(%arg0: i32) -> (i32, i32) {
    %c0_i32 = arith.constant 0 : i32
    %c0_i32_0 = arith.constant 0 : i32
    return %arg0, %c0_i32 : i32, i32
  }
  func.func @transform_1(%arg0: i32) -> (i32, i32) {
    %c0_i32 = arith.constant 0 : i32
    %c0_i32_0 = arith.constant 0 : i32
    return %arg0, %c0_i32 : i32, i32
  }
  func.func @transform_2(%arg0: i32) -> (i32, i32) {
    %c0_i32 = arith.constant 0 : i32
    %c0_i32_0 = arith.constant 0 : i32
    %c0_i32_1 = arith.constant 0 : i32
    return %c0_i32, %c0_i32_0 : i32, i32
  }
  func.func @transform_3(%arg0: i32) -> (i32, i32) {
    %c0_i32 = arith.constant 0 : i32
    %c0_i32_0 = arith.constant 0 : i32
    %c0_i32_1 = arith.constant 0 : i32
    return %c0_i32, %c0_i32_0 : i32, i32
  }
  func.func @transform_4(%arg0: i32) -> (i32, i32) {
    %c0_i32 = arith.constant 0 : i32
    %c0_i32_0 = arith.constant 0 : i32
    %c0_i32_1 = arith.constant 0 : i32
    return %c0_i32, %c0_i32_0 : i32, i32
  }
  func.func @transform_5(%arg0: i32) -> (i32, i32) {
    %c0_i32 = arith.constant 0 : i32
    %c0_i32_0 = arith.constant 0 : i32
    %c0_i32_1 = arith.constant 0 : i32
    return %c0_i32, %c0_i32_0 : i32, i32
  }
  func.func @transform_6(%arg0: i32) -> (i32, i32) {
    %c0_i32 = arith.constant 0 : i32
    %c0_i32_0 = arith.constant 0 : i32
    %c0_i32_1 = arith.constant 0 : i32
    return %c0_i32, %c0_i32_0 : i32, i32
  }
  func.func @transform_7(%arg0: i32) -> (i32, i32) {
    %c0_i32 = arith.constant 0 : i32
    %c0_i32_0 = arith.constant 0 : i32
    %c0_i32_1 = arith.constant 0 : i32
    return %c0_i32, %c0_i32_0 : i32, i32
  }
  func.func @transform_8(%arg0: i32) -> (i32, i32) {
    %c0_i32 = arith.constant 0 : i32
    %c0_i32_0 = arith.constant 0 : i32
    return %arg0, %c0_i32 : i32, i32
  }
}

</mosaic_0001>

<bundles_post_ra>
// kernel: _critic_forward_impl.1
= control target key start
LH: loop header
LB: loop body
LE: loop exit
PB: predicated region body
PF: predicated region fallthrough
CT: control target
= control target key end

     0   :  { %vm44_vm0 = vcmask 1045504   ;;  %vm40_vm1 = vcmask 48128   ;;  %v517_v0 = vmov 0.0   ;;  %vm518_vm2 = vmmov 0   ;;  %s519_s23 = smov 64   ;;  %s520_s27 = smov 32   ;;  %s643_s3 = inlined_call_operand.vmem [shape: f32[6,64], index: 3, kind: input, shape index: {}]   ;;  %s644_s1 = inlined_call_operand.vmem [shape: f32[8,6], index: 1, kind: input, shape index: {}]   ;;  %s645_s2 = inlined_call_operand.vmem [shape: bf16[48,64], index: 2, kind: input, shape index: {}]   ;;  %s646_s0 = inlined_call_operand.vmem [shape: bf16[8,48], index: 0, kind: input, shape index: {}]   ;;  %s647_s4 = inlined_call_operand.vmem [shape: bf16[64,32], index: 4, kind: input, shape index: {}]   ;;  %s648_s7 = inlined_call_operand.vmem [shape: f32[1,161], index: 7, kind: input, shape index: {}]   ;;  %s649_s5 = inlined_call_operand.vmem [shape: bf16[32,32], index: 5, kind: input, shape index: {}]   ;;  %s650_s6 = inlined_call_operand.vmem [shape: bf16[32,16], index: 6, kind: input, shape index: {}]   ;;  %s651_s8 = inlined_call_operand.vmem [shape: f32[8,1], index: 8, kind: output, shape index: {}]  }
   0x1   :  { %457 = vmatprep.subr.mxu1 %v517_v0  ;;  %v39_v1 = vld [vmem:[%s643_s3] sm:$0x3f]  ;;  %459 = vmatprep.mubr.msk.f32.mxu1 %vm518_vm2, %v517_v0  ;;  %v507_v4 = vld [vmem:[%s645_s2 + $0x8] sm:$0xff]   ;;  %v508_v5 = vld [vmem:[%s645_s2 + $0x10] sm:$0xff]   ;;  %vm136_vm3 = vcmask 392192   ;;  %vm224_vm4 = vcmask 523264  }
   0x2   :  { %v38_v2 = vld [vmem:[%s644_s1] sm:$0xff]  ;;  %458 = vmatpush3.msk.msra.mxu1 %vm44_vm0, %v39_v1  ;;  %472 = vmatprep.subr.bf16.mxu0 %v517_v0  ;;  %v510_v8 = vld [vmem:[%s647_s4 + $0x8] sm:$0xff]   ;;  %v511_v9 = vld [vmem:[%s647_s4 + $0x10] sm:$0xff]   ;;  %vm289_vm5 = vcmask 261120   ;;  %s521_s3 = smov 112   ;;  %vm406_vm6 = vcmask 130048  }
   0x3   :  { %v506_v3 = vld [vmem:[%s645_s2] sm:$0xff]   ;;  %460 = vmatmul.mubr.msk.f32.vlgmr.msra.gmra.mrb[0].mxu1 %vm40_vm1, %v38_v2  ;;  %462 = vmatprep.subr.bf16.mxu1 %v517_v0  ;;  %v512_v10 = vld [vmem:[%s647_s4 + $0x18] sm:$0xff]   ;;  %v514_v23 = vld [vmem:[%s649_s5 + $0x8] sm:$0xff]   ;;  %vm415_vm7 = vcmask 7168  }
   0x4   :  { %463 = vmatpush3.bf16.msra.mxu1 %v506_v3  ;;  %468 = vmatprep.mubr.msk.bf16.mxu1 %vm518_vm2, %v517_v0  ;;  %v31_v6 = vld [vmem:[%s646_s0] sm:$0xf]  ;;  %v516_v33 = vld [vmem:[%s650_s6 + $0x8] sm:$0xff]  }
   0x5   :  { %464 = vmatprep.subr.bf16.mxu1 %v517_v0  ;;  %480 = vmatprep.mubr.msk.bf16.mxu0 %vm518_vm2, %v517_v0  ;;  %v509_v7 = vld [vmem:[%s647_s4] sm:$0xff]  }
   0x6   :  { %473 = vmatpush3.bf16.msra.mxu0 %v509_v7  ;;  %v427_v11 = vld [vmem:[%s648_s7] ss:$0 sm:$0xff]  ;;  %v436_v34 = vld [vmem:[%s648_s7 + $0x1] ss:$0 sm:$0xff] }
   0x7   :  { %474 = vmatprep.subr.bf16.mxu0 %v517_v0  ;;  %221 = vrot.lane.b32.xlu0 %v427_v11, %s519_s23  ;;  %v513_v12 = vld [vmem:[%s649_s5] sm:$0xff]  }
   0x8   :  { %465 = vmatpush3.bf16.msra.mxu1 %v507_v4  ;;  %v515_v24 = vld [vmem:[%s650_s6] sm:$0xff]   ;;  %402 = vrot.lane.b32.xlu1 %v436_v34, %s521_s3  ;;  %s522_s6 = smov 96  }
   0x9   :  { %466 = vmatprep.subr.bf16.mxu1 %v517_v0 }
   0xa   :  { %475 = vmatpush3.bf16.msra.mxu0 %v510_v8 }
   0xb   :  { %476 = vmatprep.subr.bf16.mxu0 %v517_v0  ;;  %286 = vrot.lane.b32.xlu0 %v427_v11, %s520_s27 }
   0xc   :  { %467 = vmatpush3.bf16.msra.mxu1 %v508_v5 }
   0xd   :  { %484 = vmatprep.subr.bf16.mxu1 %v517_v0 }
   0xe   :  { %477 = vmatpush3.bf16.msra.mxu0 %v511_v9 }
   0xf   :  { %469 = vmatmul.mubr.msk.bf16.vlgmr.msra.gmra.mrb[4].mxu1 %vm136_vm3, %v31_v6  ;;  %478 = vmatprep.subr.bf16.mxu0 %v517_v0 }
  0x10   :  { %488 = vmatprep.mubr.msk.bf16.mxu1 %vm518_vm2, %v517_v0  ;;  %485 = vmatpush3.bf16.msra.mxu1 %v513_v12 }
  0x11   :  { %486 = vmatprep.subr.bf16.mxu1 %v517_v0 }
  0x12   :  { %479 = vmatpush3.bf16.msra.mxu0 %v512_v10 }
  0x13   :  { %492 = vmatprep.subr.bf16.mxu0 %v517_v0 }
  0x14   :  { %487 = vmatpush3.bf16.msra.mxu1 %v514_v23 }
  0x79   :  { %v222_v25 = vpop.permute.xlu0 %221 }
  0x7a   :  { %v403_v47 = vpop.permute.xlu1 %402 }
  0x7d   :  { %v287_v35 = vpop.permute.xlu0 %286 }
  0xd6   :  { %v114_v13 = vpop.f32.mrb[0].mxu1 }
  0xd7   :  { %v461_v14 = vpop.f32.mrb[1].mxu1 }
  0xe2   :  { %v174_v15 = vpop.f32.mrb[4].mxu1 }
  0xe3   :  { %v175_v16 = vadd.f32 %v174_v15, %v114_v13  ;;  %v470_v17 = vpop.f32.mrb[5].mxu1 }
  0xe4   :  { %v177_v18 = vpop.f32.mrb[6].mxu1 }
  0xe5   :  { %v186_v19 = vadd.f32 %v427_v11, %v175_v16  ;;  %v471_v20 = vpop.f32.mrb[7].mxu1 }
  0xe7   :  { %v187_v21 = vmax.f32 %v186_v19, 0.0 }
  0xe9   :  { %v188_v22 = vpack.c.bf16 %v187_v21, %v187_v21 }
  0xeb   :  { %481 = vmatmul.mubr.msk.bf16.vlgmr.msra.gmra.mrb[0].mxu0 %vm224_vm4, %v188_v22 }
  0xec   :  { %496 = vmatprep.mubr.msk.bf16.mxu0 %vm518_vm2, %v517_v0  ;;  %493 = vmatpush3.bf16.msra.mxu0 %v515_v24 }
  0xed   :  { %494 = vmatprep.subr.bf16.mxu0 %v517_v0 }
  0xf0   :  { %495 = vmatpush3.bf16.msra.mxu0 %v516_v33 }
 0x1be   :  { %v262_v26 = vpop.f32.mrb[0].mxu0 }
 0x1bf   :  { %v263_v27 = vadd.f32 %v262_v26, %v222_v25  ;;  %v482_v28 = vpop.f32.mrb[1].mxu0 }
 0x1c0   :  { %v265_v29 = vpop.f32.mrb[2].mxu0 }
 0x1c1   :  { %v268_v30 = vmax.f32 %v263_v27, 0.0  ;;  %v483_v31 = vpop.f32.mrb[3].mxu0 }
 0x1c3   :  { %v269_v32 = vpack.c.bf16 %v268_v30, %v268_v30 }
 0x1c5   :  { %489 = vmatmul.mubr.msk.bf16.vlgmr.msra.gmra.mrb[8].mxu1 %vm289_vm5, %v269_v32 }
 0x298   :  { %v327_v36 = vpop.f32.mrb[8].mxu1 }
 0x299   :  { %v328_v37 = vadd.f32 %v327_v36, %v287_v35  ;;  %v490_v38 = vpop.f32.mrb[9].mxu1 }
 0x29a   :  { %v330_v39 = vpop.f32.mrb[10].mxu1 }
 0x29b   :  { %v333_v40 = vmax.f32 %v328_v37, 0.0  ;;  %v491_v41 = vpop.f32.mrb[11].mxu1 }
 0x29d   :  { %v335_v42 = vpack.c.bf16 %v333_v40, %v333_v40 }
 0x29f   :  { %497 = vmatmul.mubr.msk.bf16.vlgmr.msra.gmra.mrb[4].mxu0 %vm289_vm5, %v335_v42 }
 0x372   :  { %v395_v43 = vpop.f32.mrb[4].mxu0 }
 0x373   :  { %v396_v44 = vadd.f32 %v436_v34, %v395_v43  ;;  %v498_v45 = vpop.f32.mrb[5].mxu0 }
 0x374   :  { %v398_v46 = vpop.f32.mrb[6].mxu0 }
 0x375   :  { %v401_v48 = vmax.f32 %v396_v44, 0.0  ;;  %v499_v49 = vpop.f32.mrb[7].mxu0 }
 0x377   :  { %v405_v50 = vmul.f32 %v403_v47, %v401_v48 }
 0x379   :  { %v407_v51 = vsel %vm406_vm6, %v405_v50, 0.0 }
 0x37a   :  { %408 = vadd.xlane.f32.xlu1 %v407_v51 }
 0x407   :  { %v409_v52 = vpop.xlane.xlu1 %408 }
 0x408   :  { %v410_v53 = vadd.f32 %v436_v34, %v409_v52 }
 0x40a   :  { %412 = vrot.lane.b32.xlu0 %v410_v53, %s522_s6 }
 0x47c   :  { %v413_v54 = vpop.permute.xlu0 %412 }
 0x47d   :  { %416 = vst.msk [vmem:[%s651_s8] sm:$0xff] %vm415_vm7, %v413_v54 }

</bundles_post_ra>
